<compile_context>
chip_gen: v7x
topology: tpu7x:2x2x1
jax: 0.10.0
libtpu: 0.0.40
codegen_flags: <defaults>
</compile_context>

<pallas_src>
import functools

import jax
import jax.numpy as jnp
from jax.experimental import pallas as pl
from jax.experimental.pallas import tpu as pltpu


def _gamma_loss_block_kernel(*refs, half, fused, delta, smooth_weight,
                             main_scale, smooth_scale, scalar_out,
                             mask_rows, row_tile=None, batch=None):
    """One block of gamma_loss.

    fused=True : refs = (gamma_ref[B,F], target_ref[B,F], out_ref)   (slice in-kernel)
    fused=False: refs = (gmag, gph, tmag, tph, out_ref)              (pre-split)
    scalar_out=True : out_ref is SMEM f32[1]   (single-block path)
    scalar_out=False: out_ref is VMEM f32[8, half] lane-dense partial (gridded path)
    """
    if fused:
        g_ref, t_ref, out_ref = refs
        gm = g_ref[:, :half]     # lane-aligned views (half % 128 == 0)
        gp = g_ref[:, half:]
        tm = t_ref[:, :half]
        tp = t_ref[:, half:]
    else:
        gmag_ref, gph_ref, tmag_ref, tph_ref, out_ref = refs
        gm = gmag_ref[...]
        gp = gph_ref[...]
        tm = tmag_ref[...]
        tp = tph_ref[...]

    # Polar -> Cartesian (EUP cos/sin + VPU muls).
    gx = gm * jnp.cos(gp)
    gy = gm * jnp.sin(gp)
    tx = tm * jnp.cos(tp)
    ty = tm * jnp.sin(tp)

    dx = gx - tx
    dy = gy - ty
    l1 = jnp.abs(dx) + jnp.abs(dy)
    huber = jnp.where(
        l1 < delta,
        0.5 * (dx * dx + dy * dy),
        delta * (l1 - 0.5 * delta),
    )
    contrib = huber * main_scale

    # Magnitude smoothness: |m[:, i+2] - 2*m[:, i+1] + m[:, i]| for i in [0, half-3].
    # Built from circular lane rotates + a lane mask; folded into the same reduction.
    # Skipped entirely at trace time when the weight is 0 (the default config).
    if smooth_weight != 0.0:
        n = gm.shape[1]
        m_p1 = pltpu.roll(gm, shift=n - 1, axis=1)   # gm[:, (i+1) % n] at lane i
        m_p2 = pltpu.roll(gm, shift=n - 2, axis=1)   # gm[:, (i+2) % n] at lane i
        second = jnp.abs(m_p2 - 2.0 * m_p1 + gm)
        lane = jax.lax.broadcasted_iota(jnp.int32, gm.shape, dimension=1)
        second = jnp.where(lane < (n - 2), second, 0.0)
        contrib = contrib + second * (smooth_weight * smooth_scale)

    # Zero out rows past the true batch size in the (possibly partial) last block.
    if mask_rows:
        row = (pl.program_id(0) * row_tile
               + jax.lax.broadcasted_iota(jnp.int32, contrib.shape, dimension=0))
        contrib = jnp.where(row < batch, contrib, 0.0)

    if scalar_out:
        # Single cross-lane reduce (XLU) + one scalar SMEM store for the whole kernel.
        out_ref[0] = jnp.sum(contrib)
    else:
        # Sublane-only reduce per block; lane-dense (8, half) store (row 0 holds the
        # partial, rows 1..7 are zero).  Final cross-lane reduce happens in the wrapper.
        partial = jnp.sum(contrib, axis=0, keepdims=True)            # (1, half)
        sub = jax.lax.broadcasted_iota(jnp.int32, (8, contrib.shape[1]), dimension=0)
        out_ref[...] = jnp.where(sub == 0, partial, 0.0)             # (8, half)


def _pick_row_tile(feat):
    """Row tile sized so 2 inputs x 2 buffers x TB x F x 4B stays ~<= 12 MiB.

    That fits comfortably under the scoped-VMEM limits of v5e/v6e/v7x once the limit
    is raised to 32 MiB (and well under v7x's 64 MiB physical per TensorCore).
    """
    budget = 12 * 1024 * 1024
    tb = budget // (16 * feat)
    tb = int(max(8, min(tb, 2048)))
    return (tb // 8) * 8


def gamma_loss_pallas(gamma, target, *, delta=1.0, smoothness_weight=0.0,
                      row_tile=None):
    """gamma/target: f32[B, F] with F even (first half magnitude, second half phase)."""
    assert gamma.shape == target.shape and gamma.ndim == 2
    B, F = gamma.shape
    assert F % 2 == 0
    half = F // 2
    if smoothness_weight != 0.0:
        assert half > 2, "need at least 3 frequency points for the smoothness term"

    gamma = gamma.astype(jnp.float32)
    target = target.astype(jnp.float32)

    fused = (half % 128 == 0)          # in-kernel mag/phase slices are lane-aligned
    main_scale = 1.0 / float(B * half)
    smooth_scale = (1.0 / float(B * (half - 2))) if half > 2 else 0.0

    if row_tile is None:
        row_tile = _pick_row_tile(F)
    assert row_tile % 8 == 0 and row_tile >= 8

    common = dict(half=half, fused=fused, delta=float(delta),
                  smooth_weight=float(smoothness_weight),
                  main_scale=main_scale, smooth_scale=smooth_scale)

    if fused:
        inputs = (gamma, target)
    else:
        # Fallback layout plumbing for half % 128 != 0.
        inputs = (gamma[:, :half], gamma[:, half:], target[:, :half], target[:, half:])

    if B <= row_tile:
        # ---- Single-block path: whole arrays in VMEM, scalar SMEM output. ----
        kernel = functools.partial(_gamma_loss_block_kernel, scalar_out=True,
                                   mask_rows=False, **common)
        loss = pl.pallas_call(
            kernel,
            out_shape=jax.ShapeDtypeStruct((1,), jnp.float32),
            in_specs=[pl.BlockSpec(memory_space=pltpu.MemorySpace.VMEM)] * len(inputs),
            out_specs=pl.BlockSpec(memory_space=pltpu.MemorySpace.SMEM),
        )(*inputs)
        return loss[0]

    # ---- Gridded path: 1-D grid over rows, per-block lane-dense partials. ----
    nb = pl.cdiv(B, row_tile)
    mask_rows = (B % row_tile != 0)
    kernel = functools.partial(_gamma_loss_block_kernel, scalar_out=False,
                               mask_rows=mask_rows, row_tile=row_tile, batch=B,
                               **common)
    if fused:
        in_specs = [pl.BlockSpec((row_tile, F), lambda i: (i, 0))] * 2
    else:
        in_specs = [pl.BlockSpec((row_tile, half), lambda i: (i, 0))] * 4

    partials = pl.pallas_call(
        kernel,
        out_shape=jax.ShapeDtypeStruct((nb * 8, half), jnp.float32),
        grid=(nb,),
        in_specs=in_specs,
        out_specs=pl.BlockSpec((8, half), lambda i: (i, 0)),
        compiler_params=pltpu.CompilerParams(
            dimension_semantics=("parallel",),       # both v7x TCs take half the grid
            vmem_limit_bytes=32 * 1024 * 1024,
        ),
    )(*inputs)
    # One final cross-lane reduce outside the kernel.
    return jnp.sum(partials)


def gamma_loss_ref(gamma, target, *, delta=1.0, smoothness_weight=0.0):
    """Plain-JAX reference mirroring the PyTorch forward."""
    gamma = gamma.astype(jnp.float32)
    target = target.astype(jnp.float32)
    half = gamma.shape[1] // 2
    gm, gp = gamma[:, :half], gamma[:, half:]
    tm, tp = target[:, :half], target[:, half:]
    gx, gy = gm * jnp.cos(gp), gm * jnp.sin(gp)
    tx, ty = tm * jnp.cos(tp), tm * jnp.sin(tp)
    diff = jnp.abs(gx - tx) + jnp.abs(gy - ty)
    loss = jnp.mean(
        jnp.where(
            diff < delta,
            0.5 * (jnp.square(gx - tx) + jnp.square(gy - ty)),
            delta * (diff - 0.5 * delta),
        )
    )
    second = jnp.abs(gm[:, 2:] - 2.0 * gm[:, 1:-1] + gm[:, :-2])
    return loss + smoothness_weight * jnp.mean(second)


if __name__ == "__main__":
    key = jax.random.PRNGKey(0)
    k1, k2, k3, k4 = jax.random.split(key, 4)

    # 1) Small single-block path (B=2, F=256; half=128 -> fused in-kernel split).
    B, F = 2, 256
    gamma = jax.random.normal(k1, (B, F), dtype=jnp.float32)
    target = jax.random.normal(k2, (B, F), dtype=jnp.float32)

    out = jax.block_until_ready(gamma_loss_pallas(gamma, target))
    ref = jax.block_until_ready(gamma_loss_ref(gamma, target))
    assert jnp.allclose(out, ref, rtol=1e-4, atol=1e-5), (out, ref)

    # Non-zero smoothness weight exercises the fused second-difference branch.
    out_s = jax.block_until_ready(
        gamma_loss_pallas(gamma, target, smoothness_weight=0.1))
    ref_s = jax.block_until_ready(
        gamma_loss_ref(gamma, target, smoothness_weight=0.1))
    assert jnp.allclose(out_s, ref_s, rtol=1e-4, atol=1e-5), (out_s, ref_s)

    # 2) Gridded path (row_tile override keeps shapes small): partial last block,
    #    per-block lane-dense partials, parallel row axis.
    B2 = 200
    gamma2 = jax.random.normal(k3, (B2, F), dtype=jnp.float32)
    target2 = jax.random.normal(k4, (B2, F), dtype=jnp.float32)
    out_g = jax.block_until_ready(
        gamma_loss_pallas(gamma2, target2, smoothness_weight=0.1, row_tile=64))
    ref_g = jax.block_until_ready(
        gamma_loss_ref(gamma2, target2, smoothness_weight=0.1))
    assert jnp.allclose(out_g, ref_g, rtol=1e-4, atol=1e-5), (out_g, ref_g)

    # 3) Width not a multiple of 128 -> wrapper-side split fallback (default weight=0).
    B3, F3 = 4, 252
    gamma3 = jax.random.normal(k1, (B3, F3), dtype=jnp.float32)
    target3 = jax.random.normal(k2, (B3, F3), dtype=jnp.float32)
    out_o = jax.block_until_ready(gamma_loss_pallas(gamma3, target3))
    ref_o = jax.block_until_ready(gamma_loss_ref(gamma3, target3))
    assert jnp.allclose(out_o, ref_o, rtol=1e-4, atol=1e-5), (out_o, ref_o)

    print("KERNEL_OK")
</pallas_src>

<mosaic_0001>
module attributes {stable_mosaic.version = 11 : i64} {
  func.func @_gamma_loss_block_kernel(%arg0: memref<2x256xf32, #tpu.memory_space<vmem>>, %arg1: memref<2x256xf32, #tpu.memory_space<vmem>>, %arg2: memref<1xf32, #tpu.memory_space<smem>>) attributes {dimension_semantics = [], scalar_prefetch = 0 : i64, scratch_operands = 0 : i64, tpu.core_type = #tpu.core_type<tc>} {
    %c0 = arith.constant 0 : index
    %c0_0 = arith.constant 0 : index
    %0 = vector.load %arg0[%c0, %c0_0] : memref<2x256xf32, #tpu.memory_space<vmem>>, vector<2x128xf32>
    %c0_1 = arith.constant 0 : index
    %c128 = arith.constant 128 : index
    %1 = vector.load %arg0[%c0_1, %c128] : memref<2x256xf32, #tpu.memory_space<vmem>>, vector<2x128xf32>
    %c0_2 = arith.constant 0 : index
    %c0_3 = arith.constant 0 : index
    %2 = vector.load %arg1[%c0_2, %c0_3] : memref<2x256xf32, #tpu.memory_space<vmem>>, vector<2x128xf32>
    %c0_4 = arith.constant 0 : index
    %c128_5 = arith.constant 128 : index
    %3 = vector.load %arg1[%c0_4, %c128_5] : memref<2x256xf32, #tpu.memory_space<vmem>>, vector<2x128xf32>
    %4 = math.cos %1 : vector<2x128xf32>
    %5 = arith.mulf %0, %4 : vector<2x128xf32>
    %6 = math.sin %1 : vector<2x128xf32>
    %7 = arith.mulf %0, %6 : vector<2x128xf32>
    %8 = math.cos %3 : vector<2x128xf32>
    %9 = arith.mulf %2, %8 : vector<2x128xf32>
    %10 = math.sin %3 : vector<2x128xf32>
    %11 = arith.mulf %2, %10 : vector<2x128xf32>
    %12 = arith.subf %5, %9 : vector<2x128xf32>
    %13 = arith.subf %7, %11 : vector<2x128xf32>
    %14 = math.absf %12 : vector<2x128xf32>
    %15 = math.absf %13 : vector<2x128xf32>
    %16 = arith.addf %14, %15 : vector<2x128xf32>
    %cst = arith.constant 1.000000e+00 : f32
    %17 = vector.broadcast %cst : f32 to vector<2x128xf32>
    %18 = arith.cmpf olt, %16, %17 : vector<2x128xf32>
    %19 = arith.mulf %12, %12 : vector<2x128xf32>
    %20 = arith.mulf %13, %13 : vector<2x128xf32>
    %21 = arith.addf %19, %20 : vector<2x128xf32>
    %cst_6 = arith.constant 5.000000e-01 : f32
    %22 = vector.broadcast %cst_6 : f32 to vector<2x128xf32>
    %23 = arith.mulf %22, %21 : vector<2x128xf32>
    %cst_7 = arith.constant 5.000000e-01 : f32
    %24 = vector.broadcast %cst_7 : f32 to vector<2x128xf32>
    %25 = arith.subf %16, %24 : vector<2x128xf32>
    %cst_8 = arith.constant 1.000000e+00 : f32
    %26 = vector.broadcast %cst_8 : f32 to vector<2x128xf32>
    %27 = arith.mulf %26, %25 : vector<2x128xf32>
    %28 = arith.select %18, %23, %27 : vector<2x128xi1>, vector<2x128xf32>
    %cst_9 = arith.constant 3.906250e-03 : f32
    %29 = vector.broadcast %cst_9 : f32 to vector<2x128xf32>
    %30 = arith.mulf %28, %29 : vector<2x128xf32>
    %31 = vector.shape_cast %30 : vector<2x128xf32> to vector<1x2x128xf32>
    %cst_10 = arith.constant dense<0.000000e+00> : vector<1xf32>
    %32 = vector.multi_reduction <add>, %31, %cst_10 [1, 2] : vector<1x2x128xf32> to vector<1xf32>
    %33 = vector.shape_cast %32 : vector<1xf32> to vector<1x1x1xf32>
    %34 = vector.extract %33[0, 0, 0] : f32 from vector<1x1x1xf32>
    %c0_11 = arith.constant 0 : index
    %35 = memref.load %arg2[%c0_11] : memref<1xf32, #tpu.memory_space<smem>>
    memref.store %34, %arg2[%c0_11] : memref<1xf32, #tpu.memory_space<smem>>
    return
  }
}

</mosaic_0001>

<bundles_post_ra>
// kernel: tpu_custom_call.1
= control target key start
LH: loop header
LB: loop body
LE: loop exit
PB: predicated region body
PF: predicated region fallthrough
CT: control target
= control target key end

     0   :  { %7 = vsyncpa [#allocation3], 0  ;;  %s734_s0 = inlined_call_operand.hbm [shape: f32[2,256], index: 0, kind: input, shape index: {}]   ;;  %s735_s1 = inlined_call_operand.hbm [shape: f32[2,256], index: 1, kind: input, shape index: {}]   ;;  %s736_s2 = inlined_call_operand.hbm [shape: f32[1], index: 2, kind: output, shape index: {}]  }
   0x1   :  { %8 = vsyncpa [#allocation6], 0 }
   0x2   :  { %9 = vsyncpa [#allocation4], 0  ;;  %s603_s9 = smov [#allocation2]   ;;  %s604_s11 = smov [#allocation5]  }
   0x3   :  { %s16_s10 = sshll.u32 %s603_s9, 4  ;;  %s26_s12 = sshll.u32 %s604_s11, 4  ;;  %s17_s10 = int_to_ptr.vmem [resolvable:$true] %s16_s10  ;;  %s27_s12 = int_to_ptr.vmem [resolvable:$true] %s26_s12 }
   0x4   :  { %s543_s15 = scalar_lea.hbm %s734_s0, 64 }
   0x5   :  { %p544_p0 = scmp.ne.s32.totalorder %s734_s0, %s543_s15  ;;  %p547_p1 = scmp.lt.u32.totalorder %s543_s15, %s734_s0 }
   0x7   :  { %p549_p2 = pnand %p547_p1, %p544_p0 }
   0x9   :  { %552 = shalt.err (!%p549_p2)
}
   0xa   :  { %s553_s20 = scalar_lea.vmem %s17_s10, 64  ;;  %p558_p4 = scmp.lt.s32.totalorder %s17_s10, %s17_s10 }
   0xb   :  { %p554_p3 = scmp.ne.s32.totalorder %s17_s10, %s553_s20  ;;  %p559_p5 = scmp.lt.s32.totalorder %s553_s20, %s553_s20 }
   0xd   :  { %p560_p6 = por %p559_p5, %p558_p4 }
   0xf   :  { %p561_p7 = pnand %p560_p6, %p554_p3 }
  0x11   :  { %564 = shalt.err (!%p561_p7)
}
  0x12   :  { %19 = dma.hbm_to_vmem [thread:$0]  %s734_s0, 64, %s17_s10, [#allocation3]  }
  0x13   :  { %s565_s25 = scalar_lea.hbm %s735_s1, 64 }
  0x14   :  { %p566_p8 = scmp.ne.s32.totalorder %s735_s1, %s565_s25  ;;  %p569_p9 = scmp.lt.u32.totalorder %s565_s25, %s735_s1 }
  0x16   :  { %p571_p10 = pnand %p569_p9, %p566_p8 }
  0x18   :  { %574 = shalt.err (!%p571_p10)
}
  0x19   :  { %s575_s30 = scalar_lea.vmem %s27_s12, 64  ;;  %p580_p12 = scmp.lt.s32.totalorder %s27_s12, %s27_s12 }
  0x1a   :  { %p576_p11 = scmp.ne.s32.totalorder %s27_s12, %s575_s30  ;;  %p581_p13 = scmp.lt.s32.totalorder %s575_s30, %s575_s30 }
  0x1c   :  { %p582_p0 = por %p581_p13, %p580_p12 }
  0x1e   :  { %p583_p1 = pnand %p582_p0, %p576_p11 }
  0x20   :  { %586 = shalt.err (!%p583_p1)
}
  0x21   :  { %29 = dma.hbm_to_vmem [thread:$0]  %s735_s1, 64, %s27_s12, [#allocation6]  }
  0x22   :  { %597 = dma.done.wait [#allocation3], 64  }
  0x23   :  { %598 = vsyncadd [#allocation3], 4294967232 }
  0x24   :  { %599 = dma.done.wait [#allocation6], 64  }
  0x25   :  { %600 = vsyncadd [#allocation6], 4294967232  ;;  %v651_v0 = vld [vmem:[#allocation2 + $0x2] sm:$0x3]  ;;  %v653_v1 = vld [vmem:[#allocation5 + $0x2] sm:$0x3] }
  0x26   :  { %v40_v2 = vand.u32 2147483647, %v651_v0  ;;  %v43_v3 = vand.u32 2139095040, %v651_v0  ;;  %v249_v4 = vand.u32 2147483647, %v653_v1  ;;  %v252_v5 = vand.u32 2139095040, %v653_v1 }
  0x27   :  { %v605_v24 = vmov 683565275   ;;  %v606_v26 = vmov 2475754826   ;;  %v607_v28 = vmov 2131351028  }
  0x28   :  { %v44_v6 = vshrl.u32 %v43_v3, 23  ;;  %v47_v7 = vand.u32 8388607, %v40_v2  ;;  %v253_v8 = vshrl.u32 %v252_v5, 23  ;;  %v256_v9 = vand.u32 8388607, %v249_v4 }
  0x29   :  { %v608_v30 = vmov 2102212464   ;;  %v609_v32 = vmov 920167782   ;;  %v610_v40 = vmov 1326507024  }
  0x2a   :  { %v499_v10 = vadd.s32 4294967169, %v44_v6  ;;  %v507_v11 = vadd.s32 4294967169, %v253_v8  ;;  %v48_v13 = vor.u32 8388608, %v47_v7  ;;  %v257_v14 = vor.u32 8388608, %v256_v9  ;;  %s587_s6 = scalar_lea.hbm %s736_s2, 16 }
  0x2b   :  { %vm42_vm14 = vcmp.lt.s32.totalorder %v651_v0, 0  ;;  %vm41_vm15 = vcmp.le.f32.partialorder %v40_v2, 0.7853982  ;;  %p588_p2 = scmp.ne.s32.totalorder %s736_s2, %s587_s6  ;;  %p591_p3 = scmp.lt.u32.totalorder %s587_s6, %s736_s2 }
  0x2c   :  { %v50_v12 = vadd.s32 1, %v499_v10  ;;  %v259_v15 = vadd.s32 1, %v507_v11  ;;  %v663_v20 = vshll.u32 %v48_v13, 8  ;;  %v665_v22 = vshll.u32 %v257_v14, 8 }
  0x2d   :  { %p593_p4 = pnand %p591_p3, %p588_p2 }
  0x2e   :  { %vm51_vm0 = vcmp.gt.s32.totalorder %v50_v12, 0  ;;  %vm260_vm1 = vcmp.gt.s32.totalorder %v259_v15, 0 }
  0x2f   :  { %v52_v16 = vsel %vm51_vm0, %v50_v12, 0  ;;  %v261_v19 = vsel %vm260_vm1, %v259_v15, 0  ;;  %vm251_vm0 = vcmp.lt.s32.totalorder %v653_v1, 0  ;;  %vm250_vm1 = vcmp.le.f32.partialorder %v249_v4, 0.7853982 }
  0x30   :  { %v53_v17 = vshrl.u32 %v52_v16, 5  ;;  %v54_v18 = vand.u32 31, %v52_v16  ;;  %v263_v21 = vand.u32 31, %v261_v19  ;;  %v667_v34 = vshrl.u32 %v261_v19, 5 }
  0x32   :  { %v55_v23 = vsub.s32 32, %v54_v18  ;;  %v57_v25 = vshll.u32 %v605_v24, %v54_v18  ;;  %v60_v27 = vshll.u32 %v606_v26, %v54_v18  ;;  %v63_v29 = vshll.u32 %v607_v28, %v54_v18 }
  0x33   :  { %v66_v31 = vshll.u32 %v608_v30, %v54_v18  ;;  %v69_v33 = vshll.u32 %v609_v32, %v54_v18  ;;  %vm72_vm2 = vcmp.lt.s32.totalorder %v53_v17, 1  ;;  %vm73_vm3 = vcmp.lt.s32.totalorder %v53_v17, 2 }
  0x34   :  { %v56_v35 = vshrl.u32 %v605_v24, %v55_v23  ;;  %v58_v36 = vshrl.u32 %v606_v26, %v55_v23  ;;  %v61_v37 = vshrl.u32 %v607_v28, %v55_v23  ;;  %v64_v38 = vshrl.u32 %v608_v30, %v55_v23 }
  0x35   :  { %v67_v39 = vshrl.u32 %v609_v32, %v55_v23  ;;  %v70_v41 = vshrl.u32 %v610_v40, %v55_v23  ;;  %vm75_vm4 = vcmp.lt.s32.totalorder %v53_v17, 4  ;;  %v264_v45 = vsub.s32 32, %v263_v21 }
  0x36   :  { %v59_v42 = vor.u32 %v58_v36, %v57_v25  ;;  %v62_v43 = vor.u32 %v61_v37, %v60_v27  ;;  %v65_v44 = vor.u32 %v64_v38, %v63_v29  ;;  %vm74_vm5 = vcmp.lt.s32.totalorder %v53_v17, 3 }
  0x37   :  { %v68_v46 = vor.u32 %v67_v39, %v66_v31  ;;  %v71_v47 = vor.u32 %v70_v41, %v69_v33  ;;  %v266_v48 = vshll.u32 %v605_v24, %v263_v21  ;;  %v269_v56 = vshll.u32 %v606_v26, %v263_v21 }
  0x38   :  { %v76_v49 = vsel %vm72_vm2, %v56_v35, %v59_v42  ;;  %v77_v50 = vsel %vm75_vm4, %v65_v44, 2102212464  ;;  %v80_v51 = vsel %vm72_vm2, %v59_v42, %v62_v43  ;;  %v84_v52 = vsel %vm72_vm2, %v62_v43, %v65_v44 }
  0x39   :  { %v78_v53 = vsel %vm74_vm5, %v62_v43, %v77_v50  ;;  %v81_v54 = vsel %vm75_vm4, %v68_v46, 920167782  ;;  %v85_v55 = vsel %vm75_vm4, %v71_v47, 1326507024  ;;  %v265_v59 = vshrl.u32 %v605_v24, %v264_v45 }
  0x3a   :  { %v82_v57 = vsel %vm74_vm5, %v65_v44, %v81_v54  ;;  %v86_v58 = vsel %vm74_vm5, %v68_v46, %v85_v55  ;;  %v267_v60 = vshrl.u32 %v606_v26, %v264_v45  ;;  %v79_v61 = vsel %vm73_vm3, %v76_v49, %v78_v53 }
  0x3b   :  { %v83_v62 = vsel %vm73_vm3, %v80_v51, %v82_v57  ;;  %v87_v63 = vsel %vm73_vm3, %v84_v52, %v86_v58  ;;  %v270_v3 = vshrl.u32 %v607_v28, %v264_v45  ;;  %v272_v11 = vshll.u32 %v607_v28, %v263_v21 }
  0x3c   :  { %v676_v5 = vmul.u32.u64.low %v663_v20, %v87_v63  ;;  %v677_v6 = vmul.u32.u64.high %v663_v20, %v87_v63, %v676_v5  ;;  %v680_v7 = vmul.u32.u64.low %v663_v20, %v83_v62  ;;  %v681_v8 = vmul.u32.u64.high %v663_v20, %v83_v62, %v680_v7 }
  0x3d   :  { %v268_v9 = vor.u32 %v267_v60, %v266_v48  ;;  %v271_v10 = vor.u32 %v270_v3, %v269_v56  ;;  %v273_v12 = vshrl.u32 %v608_v30, %v264_v45  ;;  %v275_v13 = vshll.u32 %v608_v30, %v263_v21 }
  0x3e   :  { %v276_v14 = vshrl.u32 %v609_v32, %v264_v45  ;;  %v278_v15 = vshll.u32 %v609_v32, %v263_v21  ;;  %v279_v16 = vshrl.u32 %v610_v40, %v264_v45  ;;  %v95_v17 = vmul.u32 %v663_v20, %v79_v61 }
  0x3f   :  { %v274_v18 = vor.u32 %v273_v12, %v272_v11  ;;  %vm281_vm6 = vcmp.lt.s32.totalorder %v667_v34, 1  ;;  %vm282_vm7 = vcmp.lt.s32.totalorder %v667_v34, 2  ;;  %vm97_vm8 = vc.u32 %v677_v6, %v680_v7 }
  0x40   :  { %v98_v19 = vadd.s32 1, %v681_v8  ;;  %v277_v23 = vor.u32 %v276_v14, %v275_v13  ;;  %vm283_vm9 = vcmp.lt.s32.totalorder %v667_v34, 3  ;;  %v280_v24 = vor.u32 %v279_v16, %v278_v15 }
  0x41   :  { %vm284_vm10 = vcmp.lt.s32.totalorder %v667_v34, 4  ;;  %v285_v25 = vsel %vm281_vm6, %v265_v59, %v268_v9  ;;  %v289_v21 = vsel %vm281_vm6, %v268_v9, %v271_v10  ;;  %v293_v28 = vsel %vm281_vm6, %v271_v10, %v274_v18 }
  0x42   :  { %v99_v26 = vsel %vm97_vm8, %v98_v19, %v681_v8  ;;  %v286_v20 = vsel %vm284_vm10, %v274_v18, 2102212464  ;;  %v290_v27 = vsel %vm284_vm10, %v277_v23, 920167782  ;;  %v294_v32 = vsel %vm284_vm10, %v280_v24, 1326507024 }
  0x43   :  { %v100_v29 = vadd.s32 %v99_v26, %v95_v17  ;;  %v287_v30 = vsel %vm283_vm9, %v271_v10, %v286_v20  ;;  %v291_v31 = vsel %vm283_vm9, %v274_v18, %v290_v27  ;;  %v295_v36 = vsel %vm283_vm9, %v277_v23, %v294_v32 }
  0x44   :  { %v288_v33 = vsel %vm282_vm7, %v285_v25, %v287_v30  ;;  %v292_v35 = vsel %vm282_vm7, %v289_v21, %v291_v31  ;;  %v296_v38 = vsel %vm282_vm7, %v293_v28, %v295_v36  ;;  %v96_v57 = vadd.s32 %v680_v7, %v677_v6 }
  0x45   :  { %v101_v37 = vadd.s32 536870912, %v100_v29  ;;  %v698_v39 = vmul.u32.u64.low %v665_v22, %v292_v35  ;;  %v699_v40 = vmul.u32.u64.high %v665_v22, %v292_v35, %v698_v39  ;;  %v304_v44 = vmul.u32 %v665_v22, %v288_v33 }
  0x46   :  { %v702_v41 = vmul.u32.u64.low %v665_v22, %v296_v38  ;;  %v703_v42 = vmul.u32.u64.high %v665_v22, %v296_v38, %v702_v41  ;;  %vm132_vm8 = vweird.f32 %v651_v0 }
  0x47   :  { %v102_v43 = vshrl.u32 %v101_v37, 30  ;;  %v307_v46 = vadd.s32 1, %v699_v40 }
  0x48   :  { %vm306_vm11 = vc.u32 %v703_v42, %v698_v39  ;;  %v305_v13 = vadd.s32 %v698_v39, %v703_v42 }
  0x49   :  { %v103_v45 = vshll.u32 %v102_v43, 30  ;;  %v308_v34 = vsel %vm306_vm11, %v307_v46, %v699_v40  ;;  %v126_v18 = vsub.s32 4, %v102_v43 }
  0x4a   :  { %v309_v48 = vadd.s32 %v308_v34, %v304_v44 }
  0x4b   :  { %v104_v47 = vsub.s32 %v100_v29, %v103_v45  ;;  %v127_v20 = vsel %vm42_vm14, %v126_v18, %v102_v43 }
  0x4c   :  { %v310_v50 = vadd.s32 536870912, %v309_v48  ;;  %v129_v31 = vsel %vm41_vm15, 0, %v127_v20 }
  0x4d   :  { %v106_v49 = vsub.s32 0, %v104_v47  ;;  %v237_v35 = vadd.s32 3, %v129_v31  ;;  %v133_v37 = vand.u32 3, %v129_v31 }
  0x4e   :  { %v311_v52 = vshrl.u32 %v310_v50, 30 }
  0x4f   :  { %v500_v51 = vmin.u32 %v106_v49, %v104_v47  ;;  %v238_v40 = vand.u32 3, %v237_v35  ;;  %vm135_vm2 = vcmp.eq.s32.totalorder %v133_v37, 0  ;;  %vm138_vm3 = vcmp.eq.s32.totalorder %v133_v37, 2 }
  0x50   :  { %v312_v54 = vshll.u32 %v311_v52, 30  ;;  %v335_v30 = vsub.s32 4, %v311_v52  ;;  %vm134_vm6 = vcmp.lt.s32.totalorder %v133_v37, 2 }
  0x51   :  { %v108_v53 = vclz %v500_v51  ;;  %vm240_vm4 = vcmp.eq.s32.totalorder %v238_v40, 0  ;;  %vm243_vm5 = vcmp.eq.s32.totalorder %v238_v40, 2  ;;  %vm239_vm7 = vcmp.lt.s32.totalorder %v238_v40, 2 }
  0x52   :  { %v313_v56 = vsub.s32 %v309_v48, %v312_v54  ;;  %v336_v36 = vsel %vm251_vm0, %v335_v30, %v311_v52 }
  0x53   :  { %v501_v55 = vadd.s32 4294967294, %v108_v53  ;;  %v338_v39 = vsel %vm250_vm1, 0, %v336_v36 }
  0x54   :  { %v315_v58 = vsub.s32 0, %v313_v56  ;;  %v446_v43 = vadd.s32 3, %v338_v39  ;;  %v342_v4 = vand.u32 3, %v338_v39 }
  0x55   :  { %vm502_vm12 = vcmp.lt.s32.totalorder %v501_v55, 0 }
  0x56   :  { %v111_v22 = vsel %vm502_vm12, 0, %v501_v55  ;;  %v508_v62 = vmin.u32 %v315_v58, %v313_v56  ;;  %vm347_vm9 = vcmp.eq.s32.totalorder %v342_v4, 2  ;;  %vm343_vm11 = vcmp.lt.s32.totalorder %v342_v4, 2 }
  0x57   :  { %v112_v59 = vsub.s32 32, %v111_v22  ;;  %v113_v60 = vshll.u32 %v104_v47, %v111_v22  ;;  %v116_v61 = vsub.s32 4294967266, %v111_v22  ;;  %v447_v47 = vand.u32 3, %v446_v43 }
  0x58   :  { %v317_v5 = vclz %v508_v62  ;;  %vm344_vm12 = vcmp.eq.s32.totalorder %v342_v4, 0 }
  0x59   :  { %v114_v63 = vshrl.u32 %v96_v57, %v112_v59  ;;  %v117_v3 = vadd.s32 127, %v116_v61  ;;  %vm452_vm10 = vcmp.eq.s32.totalorder %v447_v47, 2 }
  0x5a   :  { %v509_v10 = vadd.s32 4294967294, %v317_v5 }
  0x5b   :  { %v115_v8 = vor.u32 %v114_v63, %v113_v60  ;;  %v118_v9 = vshll.u32 %v117_v3, 23 }
  0x5c   :  { %vm510_vm13 = vcmp.lt.s32.totalorder %v509_v10, 0 }
  0x5d   :  { %v119_v11 = vor.u32 4788187, %v118_v9  ;;  %v122_v12 = vcvt.s32.f32 %v115_v8  ;;  %v320_v6 = vsel %vm510_vm13, 0, %v509_v10  ;;  %vm449_vm13 = vcmp.eq.s32.totalorder %v447_v47, 0 }
  0x5e   :  { %v321_v7 = vsub.s32 32, %v320_v6  ;;  %v322_v15 = vshll.u32 %v313_v56, %v320_v6  ;;  %v325_v16 = vsub.s32 4294967266, %v320_v6  ;;  %v36_v56 = vld [vmem:[#allocation2] sm:$0x3] }
  0x5f   :  { %v120_v14 = vand.u32 2147483647, %v119_v11 }
  0x60   :  { %v323_v19 = vshrl.u32 %v305_v13, %v321_v7  ;;  %v326_v23 = vadd.s32 127, %v325_v16 }
  0x61   :  { %v123_v17 = vmul.f32 %v122_v12, %v120_v14 }
  0x62   :  { %v324_v25 = vor.u32 %v323_v19, %v322_v15  ;;  %v327_v21 = vshll.u32 %v326_v23, 23 }
  0x63   :  { %v124_v24 = vxor.u32 2147483648, %v123_v17 }
  0x64   :  { %v328_v28 = vor.u32 4788187, %v327_v21  ;;  %v331_v29 = vcvt.s32.f32 %v324_v25 }
  0x65   :  { %v125_v26 = vsel %vm42_vm14, %v124_v24, %v123_v17  ;;  %vm448_vm14 = vcmp.lt.s32.totalorder %v447_v47, 2 }
  0x66   :  { %v128_v27 = vsel %vm41_vm15, %v651_v0, %v125_v26  ;;  %v329_v32 = vand.u32 2147483647, %v328_v28  ;;  %vm341_vm15 = vweird.f32 %v653_v1  ;;  %v38_v0 = vld [vmem:[#allocation5] sm:$0x3] }
  0x67   :  { %535 = vcosq.f32 %v128_v27 }
  0x68   :  { %537 = vsinq.f32 %v128_v27  ;;  %v332_v33 = vmul.f32 %v331_v29, %v329_v32 }
  0x6a   :  { %v333_v2 = vxor.u32 2147483648, %v332_v33 }
  0x6c   :  { %v334_v38 = vsel %vm251_vm0, %v333_v2, %v332_v33 }
  0x6d   :  { %v337_v41 = vsel %vm250_vm1, %v653_v1, %v334_v38  ;;  %vm471_vm1 = vcmask 1041408  }
  0x6e   :  { %539 = vcosq.f32 %v337_v41 }
  0x6f   :  { %541 = vsinq.f32 %v337_v41 }
  0x71   :  { %v536_v42 = vpop.eup %535 }
  0x72   :  { %v538_v44 = vpop.eup %537  ;;  %v139_v45 = vxor.u32 2147483648, %v536_v42 }
  0x73   :  { %v136_v46 = vxor.u32 2147483648, %v538_v44 }
  0x74   :  { %v140_v48 = vsel %vm138_vm3, %v139_v45, %v538_v44  ;;  %v245_v50 = vsel %vm243_vm5, %v139_v45, %v538_v44 }
  0x75   :  { %v137_v34 = vsel %vm135_vm2, %v536_v42, %v136_v46  ;;  %v242_v49 = vsel %vm240_vm4, %v536_v42, %v136_v46 }
  0x76   :  { %v141_v51 = vsel %vm134_vm6, %v137_v34, %v140_v48  ;;  %v246_v52 = vsel %vm239_vm7, %v242_v49, %v245_v50 }
  0x77   :  { %v142_v57 = vsel %vm132_vm8, nan, %v141_v51  ;;  %v247_v22 = vsel %vm132_vm8, nan, %v246_v52 }
  0x78   :  { %v540_v53 = vpop.eup %539  ;;  %v143_v63 = vmul.f32 %v142_v57, %v36_v56  ;;  %v248_v3 = vmul.f32 %v247_v22, %v36_v56 }
  0x79   :  { %v542_v54 = vpop.eup %541  ;;  %v348_v55 = vxor.u32 2147483648, %v540_v53 }
  0x7a   :  { %v345_v58 = vxor.u32 2147483648, %v542_v54 }
  0x7b   :  { %v349_v59 = vsel %vm347_vm9, %v348_v55, %v542_v54  ;;  %v454_v60 = vsel %vm452_vm10, %v348_v55, %v542_v54 }
  0x7c   :  { %v346_v61 = vsel %vm344_vm12, %v540_v53, %v345_v58  ;;  %v451_v62 = vsel %vm449_vm13, %v540_v53, %v345_v58 }
  0x7d   :  { %v350_v5 = vsel %vm343_vm11, %v346_v61, %v349_v59  ;;  %v455_v8 = vsel %vm448_vm14, %v451_v62, %v454_v60 }
  0x7e   :  { %v351_v9 = vsel %vm341_vm15, nan, %v350_v5  ;;  %v456_v10 = vsel %vm341_vm15, nan, %v455_v8 }
  0x7f   :  { %v352_v11 = vmul.f32 %v351_v9, %v38_v0  ;;  %v457_v12 = vmul.f32 %v456_v10, %v38_v0 }
  0x81   :  { %v458_v13 = vsub.f32 %v143_v63, %v352_v11  ;;  %v459_v14 = vsub.f32 %v248_v3, %v457_v12 }
  0x83   :  { %v460_v6 = vand.u32 2147483647, %v458_v13  ;;  %v461_v7 = vand.u32 2147483647, %v459_v14  ;;  %v464_v15 = vmul.f32 %v458_v13, %v458_v13  ;;  %v465_v1 = vmul.f32 %v459_v14, %v459_v14 }
  0x85   :  { %v462_v16 = vadd.f32 %v461_v7, %v460_v6  ;;  %v466_v17 = vadd.f32 %v465_v1, %v464_v15 }
  0x87   :  { %vm463_vm0 = vcmp.lt.f32.partialorder %v462_v16, 1.0  ;;  %v467_v18 = vmul.f32 0.5, %v466_v17  ;;  %v515_v19 = vadd.f32 -0.5, %v462_v16 }
  0x89   :  { %v469_v23 = vsel %vm463_vm0, %v467_v18, %v515_v19 }
  0x8a   :  { %v470_v24 = vmul.f32 0.00390625, %v469_v23 }
  0x8c   :  { %v472_v25 = vsel %vm471_vm1, %v470_v24, 0.0 }
  0x8d   :  { %473 = vadd.xlane.f32.xlu0 %v472_v25 }
 0x11a   :  { %v474_v21 = vpop.xlane.xlu0 %473 }
 0x11b   :  { %v475_v26 = vrot.slane %v474_v21, 4 }
 0x11d   :  { %v476_v20 = vadd.f32 %v475_v26, %v474_v21 }
 0x11f   :  { %v477_v27 = vrot.slane %v476_v20, 2 }
 0x121   :  { %v478_v28 = vadd.f32 %v477_v27, %v476_v20 }
 0x123   :  { %v479_v29 = vrot.slane %v478_v28, 1 }
 0x125   :  { %v480_v30 = vadd.f32 %v479_v29, %v478_v28 }
 0x127   :  { %524 = vpush %v480_v30 }
 0x158   :  { %s525_s1 = spop %524 }
 0x159   :  { %483 = sst [smem:[#allocation7]] %s525_s1 }
 0x15a   :  { %596 = shalt.err (!%p593_p4)
}
 0x15b   :  { %s611_s11 = smov [#allocation7]  }
 0x15c   :  { %491 = dma.smem_to_hbm %s611_s11, 16, %s736_s2, [#allocation4]  }
 0x15d   :  { %601 = dma.done.wait [#allocation4], 16  }
 0x15e   :  { %602 = vsyncadd [#allocation4], 4294967280 }
 0x15f   :  { %495 = sfence }
 0x160   :  { %496 = vsyncpa [#allocation3], 1 }
 0x161   :  { %497 = vsyncpa [#allocation6], 1 }
 0x162   :  { %498 = vsyncpa [#allocation4], 1 }

</bundles_post_ra>
